<compile_context>
chip_gen: v7x
topology: tpu7x:2x2x1
jax: 0.10.0
libtpu: 0.0.40
codegen_flags: <defaults>
</compile_context>

<pallas_src>
import functools

import jax
import jax.numpy as jnp
from jax.experimental import pallas as pl
from jax.experimental.pallas import tpu as pltpu


# ----------------------------------------------------------------------------
# VMEM limit: per-generation instead of a hard-coded 64 MiB
# ----------------------------------------------------------------------------
@functools.lru_cache(maxsize=None)
def _vmem_limit_bytes():
    try:
        cap = int(pltpu.get_tpu_info().vmem_capacity_bytes)
    except Exception:
        cap = 128 * 1024 * 1024
    # leave headroom for Mosaic internal scratch / double buffers:
    #   v7x (64 MiB)  -> 48 MiB ; v5e/v6e (128 MiB) -> 96 MiB
    return min((cap * 3) // 4, 100 * 1024 * 1024)


# ----------------------------------------------------------------------------
# Tile selection helpers
# ----------------------------------------------------------------------------
def _pick_m_tile(m_total, target=512):
    """Divisor of m_total (multiple of 8), <= target rows, preferring >= 2
    grid steps so both v7x TensorCores get work."""
    divs = [t for t in range(8, m_total + 1, 8) if m_total % t == 0]
    if not divs:
        return m_total
    good = [t for t in divs if t <= target and m_total // t >= 2]
    if good:
        return max(good)
    small = [t for t in divs if t <= target]
    return max(small) if small else min(divs)


def _pick_row_tile(h_out, w_out, n_batch, target=512):
    """Row tile TH dividing h_out with (TH*w_out) % 8 == 0, M tile near target;
    if N == 1 force >= 2 row tiles (v7x megacore)."""
    cands = [th for th in range(1, h_out + 1)
             if h_out % th == 0 and (th * w_out) % 8 == 0]
    if not cands:
        return h_out                      # full-dim block is always legal
    fit = [th for th in cands if th * w_out <= target]
    th = max(fit) if fit else min(cands)
    if n_batch == 1 and h_out // th < 2:
        smaller = [t for t in cands if h_out // t >= 2 and t * w_out <= target]
        if not smaller:
            smaller = [t for t in cands if h_out // t >= 2]
        if smaller:
            th = max(smaller)
    return th


# ----------------------------------------------------------------------------
# Kernels
# ----------------------------------------------------------------------------
def _matmul_prelu_kernel(x_ref, w_ref, alpha_ref, o_ref):
    # x_ref : (m_tile, 128)       bf16   wrapper-side im2col tile (lane-dense K)
    # w_ref : (128, cout_pad)     bf16
    # alpha : (1, 1)              f32    SMEM
    # o_ref : (m_tile, cout_pad)  f32    lane-dense output
    acc = jnp.dot(x_ref[...], w_ref[...], preferred_element_type=jnp.float32)
    a = alpha_ref[0, 0]
    o_ref[...] = jnp.where(acc >= 0.0, acc, a * acc)


def _make_tap_dot_kernel(taps, th, w_out, cin, cout_pad):
    """Large-Cin path: 9 accumulated dots in natural (M, Cin) layout (no
    cross-lane concat).  taps: static (phase_idx, row_off, col_off)."""
    m_tile = th * w_out

    def kernel(x_ref, w_ref, alpha_ref, o_ref):
        # x_ref : (s*s, ph_h, ph_w, cin)  bf16  whole padded image (per batch)
        # w_ref : (9, cin, cout_pad)      bf16
        # alpha : (1, 1)                  f32   SMEM
        # o_ref : (m_tile, cout_pad)      f32
        r0 = pl.multiple_of(pl.program_id(1) * th, th)
        acc = jnp.zeros((m_tile, cout_pad), jnp.float32)
        for t, (ph, qr, qc) in enumerate(taps):               # 9 static taps
            blk = x_ref[ph, pl.ds(r0 + qr, th), pl.ds(qc, w_out), :]
            acc = acc + jnp.dot(blk.reshape(m_tile, cin), w_ref[t],
                                preferred_element_type=jnp.float32)
        a = alpha_ref[0, 0]
        o_ref[...] = jnp.where(acc >= 0.0, acc, a * acc)

    return kernel


# ----------------------------------------------------------------------------
# SingleConvBlock forward: NCHW in, NCHW out (matches the PyTorch module)
# ----------------------------------------------------------------------------
@functools.partial(jax.jit, static_argnames=("stride", "dilation", "pad"))
def single_conv_block(x_nchw, w_hwio, alpha, *, stride=1, dilation=1, pad=1):
    # TODO(synk): in a full network keep NHWC end-to-end and fold the replicate
    # pad into the kernel to drop the wrapper-side transpose/pad HBM passes.
    x = jnp.transpose(x_nchw, (0, 2, 3, 1))                    # NCHW -> NHWC
    N, H, W, Cin = x.shape
    KH, KW, wcin, Cout = w_hwio.shape
    assert (KH, KW) == (3, 3) and wcin == Cin
    s, d, p = stride, dilation, pad

    H_out = (H + 2 * p - d * (KH - 1) - 1) // s + 1
    W_out = (W + 2 * p - d * (KW - 1) - 1) // s + 1
    assert H_out > 0 and W_out > 0

    # replicate padding (padding_mode='replicate') once, then bf16 MXU inputs
    xp = jnp.pad(x.astype(jnp.float32), ((0, 0), (p, p), (p, p), (0, 0)),
                 mode="edge").astype(jnp.bfloat16)
    Hp, Wp = H + 2 * p, W + 2 * p

    Cout_pad = -(-Cout // 128) * 128          # lane-dense output stores
    alpha_s = jnp.reshape(alpha, (1, 1)).astype(jnp.float32)
    vmem_limit = _vmem_limit_bytes()
    K = 9 * Cin

    if K <= 128:
        # ---------------- small-Cin path: wrapper im2col + one matmul --------
        K_pad = 128                            # lane-aligned LHS
        pieces = [xp[:, kh * d: kh * d + s * (H_out - 1) + 1: s,
                        kw * d: kw * d + s * (W_out - 1) + 1: s, :]
                  for kh in range(3) for kw in range(3)]
        col = jnp.concatenate(pieces, axis=-1)                 # (N,Ho,Wo,K) bf16
        col = jnp.pad(col, ((0, 0), (0, 0), (0, 0), (0, K_pad - K)))
        M_total = N * H_out * W_out
        M_pad = -(-M_total // 8) * 8
        col2d = col.reshape(M_total, K_pad)
        if M_pad > M_total:
            col2d = jnp.pad(col2d, ((0, M_pad - M_total), (0, 0)))

        w2d = w_hwio.reshape(K, Cout)
        w2d = jnp.pad(w2d, ((0, K_pad - K), (0, Cout_pad - Cout))).astype(jnp.bfloat16)

        m_tile = _pick_m_tile(M_pad)
        grid = (M_pad // m_tile,)

        out2d = pl.pallas_call(
            _matmul_prelu_kernel,
            out_shape=jax.ShapeDtypeStruct((M_pad, Cout_pad), jnp.float32),
            grid=grid,
            in_specs=[
                pl.BlockSpec((m_tile, K_pad), lambda i: (i, 0)),
                pl.BlockSpec((K_pad, Cout_pad), lambda i: (0, 0)),
                pl.BlockSpec((1, 1), lambda i: (0, 0),
                             memory_space=pltpu.MemorySpace.SMEM),
            ],
            out_specs=pl.BlockSpec((m_tile, Cout_pad), lambda i: (i, 0)),
            compiler_params=pltpu.CompilerParams(
                dimension_semantics=("parallel",),
                vmem_limit_bytes=vmem_limit),
        )(col2d, w2d, alpha_s)

        out = out2d[:M_total, :Cout].reshape(N, H_out, W_out, Cout)

    else:
        # ---------------- large-Cin path: in-kernel taps, 9 accumulated dots -
        # stride decomposition: s*s spatial phases (total bytes == input size);
        # tap (kh,kw) becomes a *contiguous* slice of phase ((kh*d)%s,(kw*d)%s).
        if s == 1:
            ph_h, ph_w = Hp, Wp
            x_ph = xp[:, None]                                  # (N,1,Hp,Wp,Cin)
        else:
            ph_h, ph_w = -(-Hp // s), -(-Wp // s)
            phases = []
            for pr in range(s):
                for pc in range(s):
                    phs = xp[:, pr::s, pc::s, :]
                    phs = jnp.pad(phs, ((0, 0), (0, ph_h - phs.shape[1]),
                                        (0, ph_w - phs.shape[2]), (0, 0)))
                    phases.append(phs)
            x_ph = jnp.stack(phases, axis=1)                    # (N,s*s,ph_h,ph_w,Cin)

        taps = tuple((((kh * d) % s) * s + ((kw * d) % s),
                      (kh * d) // s, (kw * d) // s)
                     for kh in range(3) for kw in range(3))
        # prove every tap read stays inside real (non-zero-tail) phase data
        for (phix, qr, qc) in taps:
            pr, pc = phix // s, phix % s
            assert qr + H_out <= (Hp - pr + s - 1) // s
            assert qc + W_out <= (Wp - pc + s - 1) // s

        w_t = w_hwio.reshape(9, Cin, Cout)
        w_t = jnp.pad(w_t, ((0, 0), (0, 0), (0, Cout_pad - Cout))).astype(jnp.bfloat16)

        TH = _pick_row_tile(H_out, W_out, N)
        M_tile = TH * W_out
        grid = (N, H_out // TH)
        kernel = _make_tap_dot_kernel(taps, TH, W_out, Cin, Cout_pad)

        out2d = pl.pallas_call(
            kernel,
            out_shape=jax.ShapeDtypeStruct((N, H_out * W_out, Cout_pad), jnp.float32),
            grid=grid,
            in_specs=[
                # TODO(synk): for large images, row-tile this input with a halo
                # (or a single-buffered spec) so VMEM does not hold the whole
                # padded image per batch on v7x.
                pl.BlockSpec((None, s * s, ph_h, ph_w, Cin),
                             lambda n, i: (n, 0, 0, 0, 0)),
                pl.BlockSpec((9, Cin, Cout_pad), lambda n, i: (0, 0, 0)),
                pl.BlockSpec((1, 1), lambda n, i: (0, 0),
                             memory_space=pltpu.MemorySpace.SMEM),
            ],
            out_specs=pl.BlockSpec((None, M_tile, Cout_pad), lambda n, i: (n, i, 0)),
            compiler_params=pltpu.CompilerParams(
                dimension_semantics=("parallel", "parallel"),
                vmem_limit_bytes=vmem_limit),
        )(x_ph, w_t, alpha_s)

        out = out2d[..., :Cout].reshape(N, H_out, W_out, Cout)

    return jnp.transpose(out, (0, 3, 1, 2))                     # NHWC -> NCHW


# ----------------------------------------------------------------------------
# Pure-XLA reference (same semantics) for a correctness check
# ----------------------------------------------------------------------------
def _reference(x_nchw, w_hwio, alpha, *, stride, dilation, pad):
    x = jnp.transpose(x_nchw, (0, 2, 3, 1)).astype(jnp.float32)
    xp = jnp.pad(x, ((0, 0), (pad, pad), (pad, pad), (0, 0)), mode="edge")
    y = jax.lax.conv_general_dilated(
        xp, w_hwio.astype(jnp.float32),
        window_strides=(stride, stride), padding="VALID",
        rhs_dilation=(dilation, dilation),
        dimension_numbers=("NHWC", "HWIO", "NHWC"))
    y = jnp.where(y >= 0, y, alpha * y)
    return jnp.transpose(y, (0, 3, 1, 2))


if __name__ == "__main__":
    key = jax.random.PRNGKey(0)
    k1, k2, k3, k4 = jax.random.split(key, 4)
    alpha = jnp.float32(0.25)                 # nn.PReLU() default init

    # Config A (small-Cin path): SingleConvBlock(3->32, s=1, d=1, p=1), 2x3x16x16
    x_a = jax.random.normal(k1, (2, 3, 16, 16), jnp.float32)
    w_a = jax.random.normal(k2, (3, 3, 3, 32), jnp.float32) / jnp.sqrt(27.0)
    y_a = jax.block_until_ready(
        single_conv_block(x_a, w_a, alpha, stride=1, dilation=1, pad=1))
    assert y_a.shape == (2, 32, 16, 16), y_a.shape

    # Config B (large-Cin path): SingleConvBlock(32->64, s=2, d=1, p=1), 2x32x16x16
    x_b = jax.random.normal(k3, (2, 32, 16, 16), jnp.float32)
    w_b = jax.random.normal(k4, (3, 3, 32, 64), jnp.float32) / jnp.sqrt(288.0)
    y_b = jax.block_until_ready(
        single_conv_block(x_b, w_b, alpha, stride=2, dilation=1, pad=1))
    assert y_b.shape == (2, 64, 8, 8), y_b.shape

    # correctness vs XLA reference (bf16 matmul w/ f32 accumulation -> loose tol)
    r_a = _reference(x_a, w_a, alpha, stride=1, dilation=1, pad=1)
    r_b = _reference(x_b, w_b, alpha, stride=2, dilation=1, pad=1)
    assert bool(jnp.all(jnp.isfinite(y_a))) and bool(jnp.all(jnp.isfinite(y_b)))
    assert float(jnp.max(jnp.abs(y_a - r_a))) < 8e-2
    assert float(jnp.max(jnp.abs(y_b - r_b))) < 8e-2

    print("KERNEL_OK")
</pallas_src>

<mosaic_0001>
module attributes {stable_mosaic.version = 11 : i64} {
  func.func @_matmul_prelu_kernel(%arg0: i32, %arg1: memref<256x128xbf16, #tpu.memory_space<vmem>>, %arg2: memref<128x128xbf16, #tpu.memory_space<vmem>>, %arg3: memref<1x1xf32, #tpu.memory_space<smem>>, %arg4: memref<256x128xf32, #tpu.memory_space<vmem>>) attributes {dimension_semantics = [#tpu.dimension_semantics<parallel>], iteration_bounds = array<i64: 2>, scalar_prefetch = 0 : i64, scratch_operands = 0 : i64, tpu.core_type = #tpu.core_type<tc>, window_params = [{transform_indices = @transform_0, window_bounds = array<i64: 256, 128>}, {pipeline_mode = #tpu.pipeline_mode<synchronous>, transform_indices = @transform_1, window_bounds = array<i64: 128, 128>}, {transform_indices = @transform_2, window_bounds = array<i64: 1, 1>}, {transform_indices = @transform_3, window_bounds = array<i64: 256, 128>}]} {
    %c0 = arith.constant 0 : index
    %c0_0 = arith.constant 0 : index
    %0 = vector.load %arg1[%c0, %c0_0] : memref<256x128xbf16, #tpu.memory_space<vmem>>, vector<256x128xbf16>
    %c0_1 = arith.constant 0 : index
    %c0_2 = arith.constant 0 : index
    %1 = vector.load %arg2[%c0_1, %c0_2] : memref<128x128xbf16, #tpu.memory_space<vmem>>, vector<128x128xbf16>
    %cst = arith.constant dense<0.000000e+00> : vector<256x128xf32>
    %2 = tpu.matmul %0, %1, %cst {dimension_numbers = #tpu.dot_dimension_numbers<[1], [0], [0], [1], [0, 0, 1, 1], [], []>} : vector<256x128xbf16>, vector<128x128xbf16>, vector<256x128xf32> -> vector<256x128xf32>
    %c0_3 = arith.constant 0 : index
    %c0_4 = arith.constant 0 : index
    %3 = memref.load %arg3[%c0_3, %c0_4] : memref<1x1xf32, #tpu.memory_space<smem>>
    %cst_5 = arith.constant 0.000000e+00 : f32
    %4 = vector.broadcast %cst_5 : f32 to vector<256x128xf32>
    %5 = arith.cmpf oge, %2, %4 : vector<256x128xf32>
    %6 = vector.broadcast %3 : f32 to vector<256x128xf32>
    %7 = arith.mulf %6, %2 : vector<256x128xf32>
    %8 = arith.select %5, %2, %7 : vector<256x128xi1>, vector<256x128xf32>
    %c0_6 = arith.constant 0 : index
    %c0_7 = arith.constant 0 : index
    %9 = vector.load %arg4[%c0_6, %c0_7] : memref<256x128xf32, #tpu.memory_space<vmem>>, vector<256x128xf32>
    tpu.vector_store %arg4[%c0_6, %c0_7], %8 {strides = array<i32>} : memref<256x128xf32, #tpu.memory_space<vmem>>, vector<256x128xf32>,
    return
  }
  func.func @transform_0(%arg0: i32) -> (i32, i32) {
    %c0_i32 = arith.constant 0 : i32
    %c0_i32_0 = arith.constant 0 : i32
    return %arg0, %c0_i32 : i32, i32
  }
  func.func @transform_1(%arg0: i32) -> (i32, i32) {
    %c0_i32 = arith.constant 0 : i32
    %c0_i32_0 = arith.constant 0 : i32
    %c0_i32_1 = arith.constant 0 : i32
    return %c0_i32, %c0_i32_0 : i32, i32
  }
  func.func @transform_2(%arg0: i32) -> (i32, i32) {
    %c0_i32 = arith.constant 0 : i32
    %c0_i32_0 = arith.constant 0 : i32
    %c0_i32_1 = arith.constant 0 : i32
    return %c0_i32, %c0_i32_0 : i32, i32
  }
  func.func @transform_3(%arg0: i32) -> (i32, i32) {
    %c0_i32 = arith.constant 0 : i32
    %c0_i32_0 = arith.constant 0 : i32
    return %arg0, %c0_i32 : i32, i32
  }
}

</mosaic_0001>

<bundles_post_ra>
// kernel: single_conv_block.1
= control target key start
LH: loop header
LB: loop body
LE: loop exit
PB: predicated region body
PF: predicated region fallthrough
CT: control target
= control target key end

     0   :  { %s1459_s0 = inlined_call_operand.hbm [shape: bf16[512,128], index: 0, kind: input, shape index: {}]   ;;  %s1460_s1 = inlined_call_operand.hbm [shape: bf16[128,128], index: 1, kind: input, shape index: {}]   ;;  %s1461_s2 = inlined_call_operand.<no memory space> [shape: f32[1,1], index: 2, kind: input, shape index: {}]   ;;  %s1462_s3 = inlined_call_operand.hbm [shape: f32[512,128], index: 3, kind: output, shape index: {}]  }
   0x1   :  { %8 = sst [smem:[#allocation2]] %s1461_s2 }
   0x2   :  { %9 = vsyncpa [#allocation4], 0 }
   0x3   :  { %11 = vsyncpa [#allocation4 + $0x1], 0 }
   0x4   :  { %12 = vsyncpa [#allocation7], 0 }
   0x5   :  { %13 = vsyncpa [#allocation5], 0 }
   0x6   :  { %15 = vsyncpa [#allocation5 + $0x1], 0  ;;  %s1163_s14 = smov 0   ;;  %s1165_s15 = smov 0  }
   0x7   :  { %s1167_s16 = smov 0   ;;  %s1169_s17 = smov 0  }
   0x8 LB: > { %s1184_s2 = sadd.s32 4294967295, %s1131_s17   ;;  %s788_s18 = sadd.s32 4294967294, %s1131_s17   ;;  %s1131_s17 = sphi %s1169_s17, %s1482_s17   ;;  %s1127_s16 = sphi %s1167_s16, %s1481_s16   ;;  %s1123_s15 = sphi %s1165_s15, %s1480_s15   ;;  %s1119_s14 = sphi %s1163_s14, %s1479_s14  }
   0x9   : > { %p41_p0 = scmp.ne.s32.totalorder %s1123_s15, %s1119_s14  ;;  %p1463_p1 = scmp.eq.s32.totalorder %s1184_s2, 0 }
   0xa   : > { %p113_p3 = scmp.eq.s32.totalorder %s788_s18, 1  ;;  %p789_p5 = scmp.ge.s32.totalorder %s1131_s17, 1 }
   0xb   : > { %p1193_p4 = por %p1463_p1, %p41_p0  ;;  %p120_p7 = scmp.lt.s32.totalorder %s1131_s17, 3 }
   0xc   : > { %p1198_p6 = por %p113_p3, %p41_p0  ;;  %s1133_s22 = smov [#allocation6]  }
   0xd   : > { %s1466_s19 = scalar_select %p1193_p4, 1, 0 }
   0xe   : > { %s1467_s20 = scalar_select %p1198_p6, 1, 0 }
   0xf   : > { %p1203_p8 = pnand %p789_p5, %p120_p7  ;;  %s132_s23 = sshll.u32 %s1133_s22, 4  ;;  %s1207_s23 = int_to_ptr.vmem [resolvable:$true] %s132_s23 }
  0x10   : > { %s1219_s25 = sadd.s32 1, %s1131_s17   ;;  %s28_s26 = sadd.s32 1, %s1127_s16 }
  0x11   : > { %s1468_s21 = scalar_select %p1203_p8, 1, 0 }
  0x12   : > { %p926_p9 = pneg %p1203_p8  ;;  %s25_s27 = ssub.s32 %s1131_s17, %s1219_s25 }
  0x13   : > { %s1003_s30 = scalar_lea.hbm %s1460_s1, 1024 }
  0x14   : > { %p1214_p11 = pnand %p926_p9, %p1463_p1  ;;  %p1004_p12 = scmp.ne.s32.totalorder %s1460_s1, %s1003_s30 }
  0x15   : > { %p1010_p5 = scmp.lt.u32.totalorder %s1003_s30, %s1460_s1 }
  0x16   : > { %p1005_p13 = pneg %p1214_p11 }
  0x18   : > { %p1006_p0 = pnand %p1005_p13, %p1004_p12 }
  0x1a   : > { %p1007_p3 = pneg %p1006_p0 }
  0x1c   : > { %p1012_p7 = pnand %p1010_p5, %p1007_p3 }
  0x1e   : > { %1015 = shalt.err (!%p1012_p7)
}
  0x1f   : > { %s1016_s8 = scalar_lea.vmem %s1207_s23, 1024  ;;  %p1024_p2 = scmp.lt.s32.totalorder %s1207_s23, %s1207_s23 }
  0x20   : > { %p1017_p9 = scmp.ne.s32.totalorder %s1207_s23, %s1016_s8  ;;  %p1025_p6 = scmp.lt.s32.totalorder %s1016_s8, %s1016_s8 }
  0x22   : > { %p1019_p10 = pnand %p1017_p9, %p1005_p13  ;;  %p1026_p4 = por %p1025_p6, %p1024_p2 }
  0x24   : > { %p1020_p1 = pneg %p1019_p10 }
  0x26   : > { %p1027_p8 = pnand %p1026_p4, %p1020_p1 }
  0x28   : > { %1030 = shalt.err (!%p1027_p8)
}
  0x29   : > { %s1134_s9 = smov 64   ;;  %s1135_s10 = smov 4  }
  0x2a   : > { %929 = dma.hbm_to_vmem [thread:$0]  (!%p1214_p11), %s1460_s1, 1024, %s1207_s23, [#allocation7], %s1134_s9, %s1134_s9, %s1135_s10  }
  0x2b   : > { %p26_p1 = scmp.eq.s32.totalorder %s25_s27, 0  ;;  %p35_p2 = scmp.ne.s32.totalorder %s1127_s16, %s1123_s15 }
  0x2c   : > { %p36_p4 = scmp.eq.s32.totalorder %s1131_s17, 0  ;;  %p939_p6 = scmp.lt.s32.totalorder %s1131_s17, 2 }
  0x2d   : > { %s1253_s13 = scalar_select %p26_p1, %s1127_s16, %s28_s26  }
  0x2e   : > { %p37_p8 = por %p36_p4, %p35_p2  ;;  %p1470_p10 = scmp.eq.s32.totalorder %s1184_s2, 1 }
  0x2f   : > { %s149_s22 = sand.u32 1, %s1127_s16   ;;  %s828_s24 = sshll.u32 %s1131_s17, 11 }
  0x30   : > { %p1257_p12 = por %p1470_p10, %p35_p2  ;;  %s792_s28 = sshll.u32 %s149_s22, 7 }
  0x31   : > { %s1266_s4 = scalar_lea.hbm %s1459_s0, %s828_s24  ;;  %s153_s23 = scalar_lea.vmem [#allocation3], %s792_s28 }
  0x32   : > { %s160_s26 = sshll.u32 %s153_s23, 4  ;;  %p1268_p11 = pnand %p939_p6, %p37_p8  ;;  %s1272_s26 = int_to_ptr.vmem [resolvable:$true] %s160_s26 }
  0x33   : > { %s1274_s5 = scalar_lea.sflag [#allocation4], %s149_s22  ;;  %s1031_s6 = scalar_lea.hbm %s1266_s4, 2048 }
  0x34   : > { %p1032_p13 = scmp.ne.s32.totalorder %s1266_s4, %s1031_s6  ;;  %p1033_p0 = pneg %p1268_p11 }
  0x35   : > { %s1036_s11 = scalar_lea.hbm %s1459_s0, 4096  ;;  %p1037_p7 = scmp.lt.u32.totalorder %s1266_s4, %s1459_s0 }
  0x36   : > { %p1034_p3 = pnand %p1033_p0, %p1032_p13  ;;  %p1038_p9 = scmp.lt.u32.totalorder %s1036_s11, %s1031_s6 }
  0x37   : > { %p1040_p2 = scmp.lt.u32.totalorder %s1031_s6, %s1266_s4 }
  0x38   : > { %p1035_p5 = pneg %p1034_p3  ;;  %p1039_p1 = por %p1038_p9, %p1037_p7 }
  0x3a   : > { %p1041_p4 = por %p1040_p2, %p1039_p1 }
  0x3c   : > { %p1042_p6 = pnand %p1041_p4, %p1035_p5 }
  0x3e   : > { %1045 = shalt.err (!%p1042_p6)
}
  0x3f   : > { %s1046_s22 = scalar_lea.vmem %s1272_s26, 2048  ;;  %s1136_s28 = smov [#allocation3]  }
  0x40   : > { %p1047_p8 = scmp.ne.s32.totalorder %s1272_s26, %s1046_s22  ;;  %s1051_s29 = sshll.u32 %s1136_s28, 4  ;;  %s1052_s29 = int_to_ptr.vmem [resolvable:$false] %s1051_s29 }
  0x41   : > { %s1053_s30 = scalar_lea.vmem %s1052_s29, 4096  ;;  %p1054_p3 = scmp.lt.s32.totalorder %s1272_s26, %s1052_s29 }
  0x42   : > { %p1049_p10 = pnand %p1047_p8, %p1033_p0  ;;  %p1055_p7 = scmp.lt.s32.totalorder %s1053_s30, %s1046_s22 }
  0x44   : > { %p1050_p13 = pneg %p1049_p10  ;;  %p1056_p9 = por %p1055_p7, %p1054_p3 }
  0x46   : > { %p1057_p1 = pnand %p1056_p9, %p1050_p13 }
  0x48   : > { %1060 = shalt.err (!%p1057_p1)
}
  0x49   : > { %933 = dma.hbm_to_vmem [thread:$0]  (!%p1268_p11), %s1266_s4, 2048, %s1272_s26, %s1274_s5, %s1134_s9, %s1134_s9, %s1135_s10  }
  0x4a   : > { %p1473_p0 = scmp.ne.s32.totalorder %s1468_s21, 0 }
  0x4b   : > { %s1308_s23 = sand.u32 (!%p1473_p0), 1, %s1123_s15   ;;  %p1474_p5 = scmp.ne.s32.totalorder (!%p1473_p0), %s1466_s19, 0 }
  0x4c   : > { %172 = sbr.rel (%p1473_p0) target bundleno = 379 (0x17b), region = 32  ;;  %s796_s6 = sshll.u32 (!%p1473_p0), %s1308_s23, 7 }
  0x4d   : > { %s175_s7 = scalar_lea.sflag (!%p1473_p0), [#allocation4], %s1308_s23  ;;  %s1312_s8 = scalar_lea.vmem (!%p1473_p0), [#allocation3], %s796_s6 }
  0x53   : > { %1106 = dma.done.wait (%p1474_p5), %s175_s7, 2048  }
  0x54   : > { %1108 = vsyncadd (%p1474_p5), %s175_s7, 4294965248  ;;  %p1475_p11 = scmp.eq.s32.totalorder %s1184_s2, 0 }
  0x56   : > { %1110 = dma.done.wait (%p1475_p11), [#allocation7], 1024   ;;  %p1476_p2 = pmov %p1475_p11 }
  0x57   : > { %v979_v0 = vld [vmem:[#allocation6] sm:$0xff]   ;;  %v980_v1 = vld [vmem:[#allocation6 + $0x8] sm:$0xff]   ;;  %v981_v2 = vld [vmem:[#allocation6 + $0x10] sm:$0xff]   ;;  %s561_s19 = sld [smem:[#allocation2]]  ;;  %s798_s21 = sshll.u32 %s1308_s23, 8 }
  0x58   : > { %1112 = vsyncadd (%p1476_p2), [#allocation7], 4294966272  ;;  %854 = vmatprep.subr.bf16.mxu0 %v979_v0  ;;  %902 = vmatprep.subr.bf16.mxu1 %v979_v0  ;;  %v982_v3 = vld [vmem:[#allocation6 + $0x18] sm:$0xff]   ;;  %v987_v4 = vld [vmem:[%s1312_s8] sm:$0xff]   ;;  %s1346_s9 = scalar_lea.vmem [#allocation8], %s798_s21  ;;  %s829_s10 = sshll.u32 %s1184_s2, 12 }
  0x59   : > { %855 = vmatpush3.bf16.msra.mxu0 %v979_v0  ;;  %910 = vmatpush3.bf16.msra.mxu1 %v979_v0  ;;  %v988_v5 = vld [vmem:[%s1312_s8 + $0x40] sm:$0xff]   ;;  %v984_v7 = vld [vmem:[#allocation6 + $0x28] sm:$0xff]   ;;  %v985_v8 = vld [vmem:[#allocation6 + $0x30] sm:$0xff]   ;;  %s705_s4 = sshll.u32 %s1346_s9, 4  ;;  %s1410_s27 = scalar_lea.hbm %s1462_s3, %s829_s10  ;;  %s1412_s4 = int_to_ptr.vmem [resolvable:$true] %s705_s4 }
  0x5a   : > { %856 = vmatprep.subr.bf16.mxu0 %v980_v1  ;;  %903 = vmatprep.subr.bf16.mxu1 %v980_v1  ;;  %v983_v6 = vld [vmem:[#allocation6 + $0x20] sm:$0xff]   ;;  %v986_v9 = vld [vmem:[#allocation6 + $0x38] sm:$0xff]   ;;  %v989_v10 = vld [vmem:[%s1312_s8 + $0x8] sm:$0xff]   ;;  %s692_s5 = scalar_lea.sflag [#allocation5], %s1308_s23  ;;  %s1061_s11 = scalar_lea.vmem %s1412_s4, 4096 }
  0x5b   : > { %870 = vmatprep.mubr.bf16.mxu0 %v987_v4  ;;  %886 = vmatprep.mubr.bf16.mxu1 %v988_v5  ;;  %v990_v11 = vld [vmem:[%s1312_s8 + $0x48] sm:$0xff]   ;;  %v991_v12 = vld [vmem:[%s1312_s8 + $0x10] sm:$0xff]   ;;  %v993_v14 = vld [vmem:[%s1312_s8 + $0x18] sm:$0xff]   ;;  %p1062_p4 = scmp.ne.s32.totalorder %s1412_s4, %s1061_s11  ;;  %s1137_s12 = smov [#allocation8]  }
  0x5c   : > { %v992_v13 = vld [vmem:[%s1312_s8 + $0x50] sm:$0xff]   ;;  %v994_v15 = vld [vmem:[%s1312_s8 + $0x58] sm:$0xff]   ;;  %v995_v16 = vld [vmem:[%s1312_s8 + $0x20] sm:$0xff]   ;;  %s1065_s24 = sshll.u32 %s1137_s12, 4  ;;  %s1066_s24 = int_to_ptr.vmem [resolvable:$false] %s1065_s24 }
  0x5d   : > { %857 = vmatpush3.bf16.msra.mxu0 %v980_v1  ;;  %911 = vmatpush3.bf16.msra.mxu1 %v980_v1  ;;  %v996_v17 = vld [vmem:[%s1312_s8 + $0x60] sm:$0xff]   ;;  %v997_v18 = vld [vmem:[%s1312_s8 + $0x28] sm:$0xff]   ;;  %v999_v20 = vld [vmem:[%s1312_s8 + $0x30] sm:$0xff]   ;;  %v1339_v24 = vstv %s561_s19  ;;  %p1063_p6 = pnand %p1062_p4, %p1257_p12  ;;  %s1067_s22 = scalar_lea.vmem %s1066_s24, 8192 }
  0x5e   : > { %858 = vmatprep.subr.bf16.mxu0 %v981_v2  ;;  %904 = vmatprep.subr.bf16.mxu1 %v981_v2  ;;  %v998_v19 = vld [vmem:[%s1312_s8 + $0x68] sm:$0xff]   ;;  %v1000_v21 = vld [vmem:[%s1312_s8 + $0x70] sm:$0xff]   ;;  %v1001_v22 = vld [vmem:[%s1312_s8 + $0x38] sm:$0xff]   ;;  %p1068_p10 = scmp.lt.s32.totalorder %s1412_s4, %s1066_s24  ;;  %p1069_p13 = scmp.lt.s32.totalorder %s1067_s22, %s1061_s11 }
  0x5f   : > { %v1002_v23 = vld [vmem:[%s1312_s8 + $0x78] sm:$0xff]   ;;  %p1064_p8 = pneg %p1063_p6 }
  0x60   : > { %p1070_p3 = por %p1069_p13, %p1068_p10 }
  0x61   : > { %859 = vmatpush3.bf16.msra.mxu0 %v981_v2  ;;  %912 = vmatpush3.bf16.msra.mxu1 %v981_v2 }
  0x62   : > { %860 = vmatprep.subr.bf16.mxu0 %v982_v3  ;;  %905 = vmatprep.subr.bf16.mxu1 %v982_v3  ;;  %p1071_p7 = pnand %p1070_p3, %p1064_p8 }
  0x65   : > { %861 = vmatpush3.bf16.msra.mxu0 %v982_v3  ;;  %913 = vmatpush3.bf16.msra.mxu1 %v982_v3 }
  0x66   : > { %862 = vmatprep.subr.bf16.mxu0 %v983_v6  ;;  %906 = vmatprep.subr.bf16.mxu1 %v983_v6 }
  0x69   : > { %863 = vmatpush3.bf16.msra.mxu0 %v983_v6  ;;  %914 = vmatpush3.bf16.msra.mxu1 %v983_v6 }
  0x6a   : > { %864 = vmatprep.subr.bf16.mxu0 %v984_v7  ;;  %907 = vmatprep.subr.bf16.mxu1 %v984_v7 }
  0x6d   : > { %865 = vmatpush3.bf16.msra.mxu0 %v984_v7  ;;  %915 = vmatpush3.bf16.msra.mxu1 %v984_v7 }
  0x6e   : > { %866 = vmatprep.subr.bf16.mxu0 %v985_v8  ;;  %908 = vmatprep.subr.bf16.mxu1 %v985_v8 }
  0x71   : > { %867 = vmatpush3.bf16.msra.mxu0 %v985_v8  ;;  %916 = vmatpush3.bf16.msra.mxu1 %v985_v8 }
  0x72   : > { %868 = vmatprep.subr.bf16.mxu0 %v986_v9  ;;  %909 = vmatprep.subr.bf16.mxu1 %v986_v9 }
  0x75   : > { %869 = vmatpush3.bf16.msra.mxu0 %v986_v9  ;;  %917 = vmatpush3.bf16.msra.mxu1 %v986_v9 }
  0x78   : > { %871 = vmatmul.mubr.bf16.vlgmr.msra.gmra.mrb[0].mxu0 %v989_v10  ;;  %887 = vmatmul.mubr.bf16.vlgmr.msra.gmra.mrb[0].mxu1 %v990_v11 }
  0x79   : > { %874 = vmatprep.mubr.bf16.mxu0 %v991_v12  ;;  %890 = vmatprep.mubr.bf16.mxu1 %v992_v13 }
  0x80   : > { %875 = vmatmul.mubr.bf16.gmra.mrb[4].mxu0 %v993_v14  ;;  %891 = vmatmul.mubr.bf16.gmra.mrb[4].mxu1 %v994_v15 }
  0x81   : > { %878 = vmatprep.mubr.bf16.mxu0 %v995_v16  ;;  %894 = vmatprep.mubr.bf16.mxu1 %v996_v17 }
  0x88   : > { %879 = vmatmul.mubr.bf16.gmra.mrb[8].mxu0 %v997_v18  ;;  %895 = vmatmul.mubr.bf16.gmra.mrb[8].mxu1 %v998_v19 }
  0x89   : > { %882 = vmatprep.mubr.bf16.mxu0 %v999_v20  ;;  %898 = vmatprep.mubr.bf16.mxu1 %v1000_v21 }
  0x90   : > { %883 = vmatmul.mubr.bf16.gmra.mrb[12].mxu0 %v1001_v22  ;;  %899 = vmatmul.mubr.bf16.gmra.mrb[12].mxu1 %v1002_v23 }
 0x14b   : > { %v872_v25 = vpop.f32.mrb[0].mxu0  ;;  %v888_v26 = vpop.f32.mrb[0].mxu1 }
 0x14c   : > { %vm564_vm0 = vcmp.ge.f32.partialorder %v872_v25, 0.0  ;;  %v597_v27 = vmul.f32 %v872_v25, %v1339_v24  ;;  %vm580_vm1 = vcmp.ge.f32.partialorder %v888_v26, 0.0  ;;  %v613_v28 = vmul.f32 %v888_v26, %v1339_v24  ;;  %v434_v29 = vpop.f32.mrb[1].mxu0  ;;  %v498_v30 = vpop.f32.mrb[1].mxu1 }
 0x14d   : > { %vm562_vm2 = vcmp.ge.f32.partialorder %v434_v29, 0.0  ;;  %v595_v31 = vmul.f32 %v1339_v24, %v434_v29  ;;  %vm578_vm3 = vcmp.ge.f32.partialorder %v498_v30, 0.0  ;;  %v611_v32 = vmul.f32 %v1339_v24, %v498_v30  ;;  %v873_v33 = vpop.f32.mrb[2].mxu0  ;;  %v889_v34 = vpop.f32.mrb[2].mxu1 }
 0x14e   : > { %v629_v35 = vsel %vm564_vm0, %v872_v25, %v597_v27  ;;  %v645_v36 = vsel %vm580_vm1, %v888_v26, %v613_v28  ;;  %vm565_vm4 = vcmp.ge.f32.partialorder %v873_v33, 0.0  ;;  %v598_v37 = vmul.f32 %v873_v33, %v1339_v24  ;;  %v437_v38 = vpop.f32.mrb[3].mxu0  ;;  %v501_v39 = vpop.f32.mrb[3].mxu1 }
 0x14f   : > { %661 = vst [vmem:[%s1346_s9 + $0x10] sm:$0xff] %v629_v35  ;;  %677 = vst [vmem:[%s1346_s9 + $0x90] sm:$0xff] %v645_v36  ;;  %v627_v40 = vsel %vm562_vm2, %v434_v29, %v595_v31  ;;  %v643_v41 = vsel %vm578_vm3, %v498_v30, %v611_v32  ;;  %vm581_vm5 = vcmp.ge.f32.partialorder %v889_v34, 0.0  ;;  %v614_v42 = vmul.f32 %v889_v34, %v1339_v24 }
 0x150   : > { %659 = vst [vmem:[%s1346_s9] sm:$0xff] %v627_v40  ;;  %675 = vst [vmem:[%s1346_s9 + $0x80] sm:$0xff] %v643_v41  ;;  %v630_v43 = vsel %vm565_vm4, %v873_v33, %v598_v37  ;;  %vm563_vm6 = vcmp.ge.f32.partialorder %v437_v38, 0.0  ;;  %v596_v44 = vmul.f32 %v1339_v24, %v437_v38  ;;  %vm579_vm7 = vcmp.ge.f32.partialorder %v501_v39, 0.0 }
 0x151   : > { %662 = vst [vmem:[%s1346_s9 + $0x18] sm:$0xff] %v630_v43  ;;  %v646_v45 = vsel %vm581_vm5, %v889_v34, %v614_v42  ;;  %v612_v46 = vmul.f32 %v1339_v24, %v501_v39 }
 0x152   : > { %678 = vst [vmem:[%s1346_s9 + $0x98] sm:$0xff] %v646_v45  ;;  %v628_v47 = vsel %vm563_vm6, %v437_v38, %v596_v44 }
 0x153   : > { %660 = vst [vmem:[%s1346_s9 + $0x8] sm:$0xff] %v628_v47  ;;  %v644_v48 = vsel %vm579_vm7, %v501_v39, %v612_v46  ;;  %v876_v49 = vpop.f32.mrb[4].mxu0  ;;  %v892_v50 = vpop.f32.mrb[4].mxu1 }
 0x154   : > { %676 = vst [vmem:[%s1346_s9 + $0x88] sm:$0xff] %v644_v48  ;;  %vm568_vm8 = vcmp.ge.f32.partialorder %v876_v49, 0.0  ;;  %v601_v51 = vmul.f32 %v876_v49, %v1339_v24  ;;  %vm584_vm9 = vcmp.ge.f32.partialorder %v892_v50, 0.0  ;;  %v617_v52 = vmul.f32 %v892_v50, %v1339_v24  ;;  %v450_v53 = vpop.f32.mrb[5].mxu0  ;;  %v514_v54 = vpop.f32.mrb[5].mxu1 }
 0x155   : > { %vm566_vm10 = vcmp.ge.f32.partialorder %v450_v53, 0.0  ;;  %v599_v55 = vmul.f32 %v1339_v24, %v450_v53  ;;  %vm582_vm11 = vcmp.ge.f32.partialorder %v514_v54, 0.0  ;;  %v615_v56 = vmul.f32 %v1339_v24, %v514_v54  ;;  %v877_v57 = vpop.f32.mrb[6].mxu0  ;;  %v893_v58 = vpop.f32.mrb[6].mxu1 }
 0x156   : > { %v633_v59 = vsel %vm568_vm8, %v876_v49, %v601_v51  ;;  %v649_v60 = vsel %vm584_vm9, %v892_v50, %v617_v52  ;;  %vm569_vm12 = vcmp.ge.f32.partialorder %v877_v57, 0.0  ;;  %v602_v61 = vmul.f32 %v877_v57, %v1339_v24  ;;  %v453_v62 = vpop.f32.mrb[7].mxu0  ;;  %v517_v63 = vpop.f32.mrb[7].mxu1 }
 0x157   : > { %665 = vst [vmem:[%s1346_s9 + $0x30] sm:$0xff] %v633_v59  ;;  %681 = vst [vmem:[%s1346_s9 + $0xb0] sm:$0xff] %v649_v60  ;;  %v631_v0 = vsel %vm566_vm10, %v450_v53, %v599_v55  ;;  %v647_v1 = vsel %vm582_vm11, %v514_v54, %v615_v56  ;;  %vm585_vm13 = vcmp.ge.f32.partialorder %v893_v58, 0.0  ;;  %v618_v2 = vmul.f32 %v893_v58, %v1339_v24 }
 0x158   : > { %663 = vst [vmem:[%s1346_s9 + $0x20] sm:$0xff] %v631_v0  ;;  %679 = vst [vmem:[%s1346_s9 + $0xa0] sm:$0xff] %v647_v1  ;;  %v634_v3 = vsel %vm569_vm12, %v877_v57, %v602_v61  ;;  %vm567_vm14 = vcmp.ge.f32.partialorder %v453_v62, 0.0  ;;  %v600_v4 = vmul.f32 %v1339_v24, %v453_v62  ;;  %vm583_vm15 = vcmp.ge.f32.partialorder %v517_v63, 0.0 }
 0x159   : > { %666 = vst [vmem:[%s1346_s9 + $0x38] sm:$0xff] %v634_v3  ;;  %v650_v5 = vsel %vm585_vm13, %v893_v58, %v618_v2  ;;  %v616_v6 = vmul.f32 %v1339_v24, %v517_v63 }
 0x15a   : > { %682 = vst [vmem:[%s1346_s9 + $0xb8] sm:$0xff] %v650_v5  ;;  %v632_v7 = vsel %vm567_vm14, %v453_v62, %v600_v4 }
 0x15b   : > { %664 = vst [vmem:[%s1346_s9 + $0x28] sm:$0xff] %v632_v7  ;;  %v648_v8 = vsel %vm583_vm15, %v517_v63, %v616_v6  ;;  %v880_v9 = vpop.f32.mrb[8].mxu0  ;;  %v896_v10 = vpop.f32.mrb[8].mxu1 }
 0x15c   : > { %680 = vst [vmem:[%s1346_s9 + $0xa8] sm:$0xff] %v648_v8  ;;  %vm572_vm0 = vcmp.ge.f32.partialorder %v880_v9, 0.0  ;;  %v605_v11 = vmul.f32 %v880_v9, %v1339_v24  ;;  %vm588_vm1 = vcmp.ge.f32.partialorder %v896_v10, 0.0  ;;  %v621_v12 = vmul.f32 %v896_v10, %v1339_v24  ;;  %v466_v13 = vpop.f32.mrb[9].mxu0  ;;  %v530_v14 = vpop.f32.mrb[9].mxu1 }
 0x15d   : > { %vm570_vm2 = vcmp.ge.f32.partialorder %v466_v13, 0.0  ;;  %v603_v15 = vmul.f32 %v1339_v24, %v466_v13  ;;  %vm586_vm3 = vcmp.ge.f32.partialorder %v530_v14, 0.0  ;;  %v619_v16 = vmul.f32 %v1339_v24, %v530_v14  ;;  %v881_v17 = vpop.f32.mrb[10].mxu0  ;;  %v897_v18 = vpop.f32.mrb[10].mxu1 }
 0x15e   : > { %v637_v19 = vsel %vm572_vm0, %v880_v9, %v605_v11  ;;  %v653_v20 = vsel %vm588_vm1, %v896_v10, %v621_v12  ;;  %vm573_vm4 = vcmp.ge.f32.partialorder %v881_v17, 0.0  ;;  %v606_v21 = vmul.f32 %v881_v17, %v1339_v24  ;;  %v469_v22 = vpop.f32.mrb[11].mxu0  ;;  %v533_v23 = vpop.f32.mrb[11].mxu1 }
 0x15f   : > { %669 = vst [vmem:[%s1346_s9 + $0x50] sm:$0xff] %v637_v19  ;;  %685 = vst [vmem:[%s1346_s9 + $0xd0] sm:$0xff] %v653_v20  ;;  %v635_v25 = vsel %vm570_vm2, %v466_v13, %v603_v15  ;;  %v651_v26 = vsel %vm586_vm3, %v530_v14, %v619_v16  ;;  %vm589_vm5 = vcmp.ge.f32.partialorder %v897_v18, 0.0  ;;  %v622_v27 = vmul.f32 %v897_v18, %v1339_v24 }
 0x160   : > { %667 = vst [vmem:[%s1346_s9 + $0x40] sm:$0xff] %v635_v25  ;;  %683 = vst [vmem:[%s1346_s9 + $0xc0] sm:$0xff] %v651_v26  ;;  %v638_v28 = vsel %vm573_vm4, %v881_v17, %v606_v21  ;;  %vm571_vm6 = vcmp.ge.f32.partialorder %v469_v22, 0.0  ;;  %v604_v29 = vmul.f32 %v1339_v24, %v469_v22  ;;  %vm587_vm7 = vcmp.ge.f32.partialorder %v533_v23, 0.0 }
 0x161   : > { %670 = vst [vmem:[%s1346_s9 + $0x58] sm:$0xff] %v638_v28  ;;  %v654_v30 = vsel %vm589_vm5, %v897_v18, %v622_v27  ;;  %v620_v31 = vmul.f32 %v1339_v24, %v533_v23 }
 0x162   : > { %686 = vst [vmem:[%s1346_s9 + $0xd8] sm:$0xff] %v654_v30  ;;  %v636_v32 = vsel %vm571_vm6, %v469_v22, %v604_v29 }
 0x163   : > { %668 = vst [vmem:[%s1346_s9 + $0x48] sm:$0xff] %v636_v32  ;;  %v652_v33 = vsel %vm587_vm7, %v533_v23, %v620_v31  ;;  %v884_v34 = vpop.f32.mrb[12].mxu0  ;;  %v900_v35 = vpop.f32.mrb[12].mxu1 }
 0x164   : > { %684 = vst [vmem:[%s1346_s9 + $0xc8] sm:$0xff] %v652_v33  ;;  %vm576_vm8 = vcmp.ge.f32.partialorder %v884_v34, 0.0  ;;  %v609_v36 = vmul.f32 %v884_v34, %v1339_v24  ;;  %vm592_vm9 = vcmp.ge.f32.partialorder %v900_v35, 0.0  ;;  %v625_v37 = vmul.f32 %v900_v35, %v1339_v24  ;;  %v482_v38 = vpop.f32.mrb[13].mxu0  ;;  %v546_v39 = vpop.f32.mrb[13].mxu1 }
 0x165   : > { %vm574_vm10 = vcmp.ge.f32.partialorder %v482_v38, 0.0  ;;  %v607_v40 = vmul.f32 %v1339_v24, %v482_v38  ;;  %vm590_vm11 = vcmp.ge.f32.partialorder %v546_v39, 0.0  ;;  %v623_v41 = vmul.f32 %v1339_v24, %v546_v39  ;;  %v885_v42 = vpop.f32.mrb[14].mxu0  ;;  %v901_v43 = vpop.f32.mrb[14].mxu1 }
 0x166   : > { %v641_v44 = vsel %vm576_vm8, %v884_v34, %v609_v36  ;;  %v657_v45 = vsel %vm592_vm9, %v900_v35, %v625_v37  ;;  %vm577_vm12 = vcmp.ge.f32.partialorder %v885_v42, 0.0  ;;  %v610_v46 = vmul.f32 %v885_v42, %v1339_v24  ;;  %v485_v47 = vpop.f32.mrb[15].mxu0  ;;  %v549_v48 = vpop.f32.mrb[15].mxu1 }
 0x167   : > { %673 = vst [vmem:[%s1346_s9 + $0x70] sm:$0xff] %v641_v44  ;;  %689 = vst [vmem:[%s1346_s9 + $0xf0] sm:$0xff] %v657_v45  ;;  %v639_v49 = vsel %vm574_vm10, %v482_v38, %v607_v40  ;;  %v655_v50 = vsel %vm590_vm11, %v546_v39, %v623_v41  ;;  %vm593_vm13 = vcmp.ge.f32.partialorder %v901_v43, 0.0  ;;  %v626_v51 = vmul.f32 %v901_v43, %v1339_v24 }
 0x168   : > { %671 = vst [vmem:[%s1346_s9 + $0x60] sm:$0xff] %v639_v49  ;;  %687 = vst [vmem:[%s1346_s9 + $0xe0] sm:$0xff] %v655_v50  ;;  %v642_v52 = vsel %vm577_vm12, %v885_v42, %v610_v46  ;;  %vm575_vm14 = vcmp.ge.f32.partialorder %v485_v47, 0.0  ;;  %v608_v53 = vmul.f32 %v1339_v24, %v485_v47  ;;  %vm591_vm15 = vcmp.ge.f32.partialorder %v549_v48, 0.0 }
 0x169   : > { %674 = vst [vmem:[%s1346_s9 + $0x78] sm:$0xff] %v642_v52  ;;  %v658_v54 = vsel %vm593_vm13, %v901_v43, %v626_v51  ;;  %v624_v55 = vmul.f32 %v1339_v24, %v549_v48 }
 0x16a   : > { %690 = vst [vmem:[%s1346_s9 + $0xf8] sm:$0xff] %v658_v54  ;;  %v640_v56 = vsel %vm575_vm14, %v485_v47, %v608_v53 }
 0x16b   : > { %672 = vst [vmem:[%s1346_s9 + $0x68] sm:$0xff] %v640_v56  ;;  %v656_v57 = vsel %vm591_vm15, %v549_v48, %v624_v55 }
 0x16c   : > { %688 = vst [vmem:[%s1346_s9 + $0xe8] sm:$0xff] %v656_v57 }
 0x16d   : > { %1074 = shalt.err (!%p1071_p7)
}
 0x16e   : > { %s1075_s28 = scalar_lea.hbm %s1410_s27, 4096  ;;  %s1079_s6 = scalar_lea.hbm %s1462_s3, 8192 }
 0x16f   : > { %p1076_p9 = scmp.ne.s32.totalorder %s1410_s27, %s1075_s28  ;;  %p1080_p5 = scmp.lt.u32.totalorder %s1410_s27, %s1462_s3 }
 0x170   : > { %p1081_p11 = scmp.lt.u32.totalorder %s1079_s6, %s1075_s28  ;;  %p1083_p4 = scmp.lt.u32.totalorder %s1075_s28, %s1410_s27 }
 0x171   : > { %p1077_p1 = pnand %p1076_p9, %p1257_p12 }
 0x172   : > { %p1082_p2 = por %p1081_p11, %p1080_p5 }
 0x173   : > { %p1078_p0 = pneg %p1077_p1 }
 0x174   : > { %p1084_p6 = por %p1083_p4, %p1082_p2 }
 0x176   : > { %p1085_p8 = pnand %p1084_p6, %p1078_p0 }
 0x178   : > { %1088 = shalt.err (!%p1085_p8)
}
 0x179   : > { %s1138_s19 = smov 128   ;;  %s1139_s21 = smov 8  }
 0x17a   : > { %924 = dma.vmem_to_hbm [thread:$0]  (%p1257_p12), %s1412_s4, 4096, %s1410_s27, %s692_s5, %s1138_s19, %s1138_s19, %s1139_s21  }
 0x17b PF: > { %s720_s9 = sand.u32 1, %s1119_s14   ;;  %p1477_p10 = scmp.ne.s32.totalorder %s1467_s20, 0 }
 0x17c   : > { %p1478_p13 = scmp.ge.s32.totalorder %s1131_s17, 2  ;;  %s721_s10 = scalar_lea.sflag [#allocation5], %s720_s9 }
 0x17e   : > { %p935_p3 = pnand %p1478_p13, %p1477_p10 }
 0x180   : > { %1114 = dma.done.wait (!%p935_p3), %s721_s10, 4096  }
 0x181   : > { %1116 = vsyncadd (!%p935_p3), %s721_s10, 4294963200  ;;  %p18_p7 = scmp.ge.s32.totalorder %s1219_s25, 4   ;;  %s1479_s14 = smov %s1123_s15 }
 0x182   : > { %s1480_s15 = smov %s1127_s16  ;;  %s1481_s16 = smov %s1253_s13 }
 0x183   : > { %s1482_s17 = smov %s1219_s25  ;;  %20 = sbr.rel (!%p18_p7) target bundleno = 8 (0x8), region = 81 }
 0x18a   :  { %726 = vsyncpa [#allocation4], 1 }
 0x18b   :  { %728 = vsyncpa [#allocation4 + $0x1], 1 }
 0x18c   :  { %729 = vsyncpa [#allocation7], 1 }
 0x18d   :  { %730 = vsyncpa [#allocation5], 1 }
 0x18e   :  { %732 = vsyncpa [#allocation5 + $0x1], 1 }

</bundles_post_ra>
